<compile_context>
chip_gen: v7x
topology: tpu7x:2x2x1
jax: 0.10.0
libtpu: 0.0.40
codegen_flags: <defaults>
</compile_context>

<pallas_src>
import jax
import jax.numpy as jnp
from jax.experimental import pallas as pl
from jax.experimental.pallas import tpu as pltpu

HIDDEN = 32                    # hidden_size
OUTPUT = 8                     # output_size
VOCAB = 50                     # vocab_size
INPUT_DIM = OUTPUT * HIDDEN    # LSTM input size = output_size * hidden_size = 256
GATES = 4 * HIDDEN             # 128 (i, f, g, o)
OUT_PAD = 128                  # output projection padded to a full 128-lane row


def decode_steps_kernel(ids_ref,      # SMEM (T, OUTPUT) int32  -- scalar prefetch
                        tbl_ref,      # VMEM (VOCAB, OUTPUT, GATES) f32 (emb folded thru W_ih)
                        h0c0_ref,     # VMEM (2, HIDDEN) f32    -- initial h (row 0), c (row 1)
                        w_hh_ref,     # VMEM (HIDDEN, GATES) bf16
                        b_gates_ref,  # VMEM (1, GATES) f32     -- b_ih + b_hh
                        w_out_ref,    # VMEM (HIDDEN, OUT_PAD) bf16 (zeros beyond OUTPUT)
                        b_out_ref,    # VMEM (1, OUT_PAD) f32
                        out_ref,      # VMEM (1, 1, OUT_PAD) f32 -- this step's logits row
                        hc_ref,       # VMEM (2, HIDDEN) f32     -- final h/c (written last step)
                        hc_scr):      # VMEM (2, HIDDEN) f32     -- carried state
    t = pl.program_id(0)

    @pl.when(t == 0)
    def _():
        hc_scr[...] = h0c0_ref[...]

    h = hc_scr[0:1, :]                       # (1, H) f32
    c = hc_scr[1:2, :]                       # (1, H) f32

    # --- gates = sum_k tbl[ids[k], k, :] + h @ W_hh^T + (b_ih + b_hh) ---------------
    # x-path: 8 aligned, full-128-lane gathers (dynamic leading-dim index) + VPU adds.
    gates = b_gates_ref[...]                 # (1, 128) f32
    for k in range(OUTPUT):                  # static 8-way unroll
        tok = ids_ref[t, k]                  # SMEM scalar read
        gates = gates + tbl_ref[tok, pl.ds(k, 1), :]     # (1, 128) f32
    # h-path: one tiny MXU push, bf16 operands, f32 accumulate.
    gates = gates + jnp.dot(h.astype(jnp.bfloat16), w_hh_ref[...],
                            preferred_element_type=jnp.float32)

    # --- LSTM cell (PyTorch gate order i, f, g, o) ----------------------------------
    sig = jax.nn.sigmoid(gates)
    i_g = sig[:, 0 * HIDDEN:1 * HIDDEN]
    f_g = sig[:, 1 * HIDDEN:2 * HIDDEN]
    o_g = sig[:, 3 * HIDDEN:4 * HIDDEN]
    g_g = jnp.tanh(gates[:, 2 * HIDDEN:3 * HIDDEN])      # tanh only on the 32-lane slice

    c_new = f_g * c + i_g * g_g
    h_new = o_g * jnp.tanh(c_new)

    # --- output projection: unmasked, lane-dense (1, 128) store ---------------------
    proj = (jnp.dot(h_new.astype(jnp.bfloat16), w_out_ref[...],
                    preferred_element_type=jnp.float32) + b_out_ref[...])
    out_ref[0] = proj

    # carry state; emit final h/c only once, on the last step
    hc_scr[0:1, :] = h_new
    hc_scr[1:2, :] = c_new

    @pl.when(t == pl.num_programs(0) - 1)
    def _():
        hc_ref[...] = hc_scr[...]


def init_params(key):
    """Raw parameters, mirroring the PyTorch module."""
    ks = jax.random.split(key, 6)
    scale = 0.1
    return {
        # nn.Embedding(vocab_size, hidden_size)
        "embedding": scale * jax.random.normal(ks[0], (VOCAB, HIDDEN), jnp.float32),
        # nn.LSTM(INPUT_DIM, HIDDEN): weight_ih (4H, I), weight_hh (4H, H), biases (4H,)
        "w_ih": scale * jax.random.normal(ks[1], (GATES, INPUT_DIM), jnp.float32),
        "w_hh": scale * jax.random.normal(ks[2], (GATES, HIDDEN), jnp.float32),
        "b_ih": scale * jax.random.normal(ks[3], (GATES,), jnp.float32),
        "b_hh": scale * jax.random.normal(ks[4], (GATES,), jnp.float32),
        # nn.Linear(HIDDEN, OUTPUT) with xavier_normal_ weight
        "w_out": (jnp.sqrt(2.0 / (HIDDEN + OUTPUT))
                  * jax.random.normal(ks[5], (OUTPUT, HIDDEN), jnp.float32)),
        "b_out": jnp.zeros((OUTPUT,), jnp.float32),
    }


def pack_params(p):
    """One-time, out-of-hot-path weight prep."""
    # Fold embedding through W_ih: tbl[v, k, g] = sum_d emb[v, d] * W_ih[g, k*H + d].
    w_ih_3d = p["w_ih"].reshape(GATES, OUTPUT, HIDDEN)                 # [g, k, d]
    tbl = jnp.einsum("vd,gkd->vkg", p["embedding"], w_ih_3d)           # (VOCAB, 8, 128) f32
    tbl = tbl.astype(jnp.float32)
    # bf16 strictly for MXU operands; everything else stays f32.
    w_hh_t = p["w_hh"].T.astype(jnp.bfloat16)                          # (H, 4H)
    b_gates = (p["b_ih"] + p["b_hh"]).reshape(1, GATES).astype(jnp.float32)
    w_out_pad = (jnp.zeros((HIDDEN, OUT_PAD), jnp.float32)
                 .at[:, :OUTPUT].set(p["w_out"].T)).astype(jnp.bfloat16)
    b_out_pad = jnp.zeros((1, OUT_PAD), jnp.float32).at[:, :OUTPUT].set(p["b_out"])
    return {"tbl": tbl, "w_hh_t": w_hh_t, "b_gates": b_gates,
            "w_out_pad": w_out_pad, "b_out_pad": b_out_pad}


def _decode_steps_impl(packed, step_ids, h0, c0):
    """Run T LSTM decode steps (teacher-forced ids) in ONE pallas_call."""
    T = step_ids.shape[0]
    # Clamp ids: VMEM reads are not bounds-checked on TPU.
    ids = jnp.clip(step_ids.astype(jnp.int32), 0, VOCAB - 1)
    h0c0 = jnp.concatenate([h0.reshape(1, HIDDEN), c0.reshape(1, HIDDEN)],
                           axis=0).astype(jnp.float32)

    grid_spec = pltpu.PrefetchScalarGridSpec(
        num_scalar_prefetch=1,
        grid=(T,),
        in_specs=[
            # Constant index_maps -> DMA'd once, VMEM-resident for all T steps.
            pl.BlockSpec((VOCAB, OUTPUT, GATES), lambda t, ids: (0, 0, 0)),
            pl.BlockSpec((2, HIDDEN), lambda t, ids: (0, 0)),
            pl.BlockSpec((HIDDEN, GATES), lambda t, ids: (0, 0)),
            pl.BlockSpec((1, GATES), lambda t, ids: (0, 0)),
            pl.BlockSpec((HIDDEN, OUT_PAD), lambda t, ids: (0, 0)),
            pl.BlockSpec((1, OUT_PAD), lambda t, ids: (0, 0)),
        ],
        out_specs=[
            pl.BlockSpec((1, 1, OUT_PAD), lambda t, ids: (t, 0, 0)),   # per-step logits row
            pl.BlockSpec((2, HIDDEN), lambda t, ids: (0, 0)),          # final h/c
        ],
        scratch_shapes=[pltpu.VMEM((2, HIDDEN), jnp.float32)],          # carried h/c
    )

    out_rows, hc = pl.pallas_call(
        decode_steps_kernel,
        out_shape=(jax.ShapeDtypeStruct((T, 1, OUT_PAD), jnp.float32),
                   jax.ShapeDtypeStruct((2, HIDDEN), jnp.float32)),
        grid_spec=grid_spec,
        compiler_params=pltpu.CompilerParams(dimension_semantics=("arbitrary",)),
    )(ids, packed["tbl"], h0c0, packed["w_hh_t"], packed["b_gates"],
      packed["w_out_pad"], packed["b_out_pad"])

    return out_rows[:, 0, :OUTPUT], hc                                  # (T, OUTPUT), (2, H)


_decode_steps_jit = jax.jit(_decode_steps_impl)


def decoder_forward(packed, input_ids, hidden, hidden_list=None):
    """Mirrors DecoderRNN.forward(input, hidden, hidden_list): one (seq=1, batch=1) step."""
    del hidden_list  # unused in the reference forward as well
    h0, c0 = hidden
    out_rows, hc = _decode_steps_jit(packed, input_ids.reshape(1, OUTPUT), h0, c0)
    out = out_rows[0:1, :]                                              # (1, OUTPUT)
    return out, (hc[0].reshape(1, 1, HIDDEN), hc[1].reshape(1, 1, HIDDEN))


def decoder_decode(packed, step_ids, hidden):
    """Amortized path: T decode steps in one kernel launch (ids supplied per step)."""
    h0, c0 = hidden
    out_rows, hc = _decode_steps_jit(packed, step_ids, h0, c0)
    return out_rows, (hc[0].reshape(1, 1, HIDDEN), hc[1].reshape(1, 1, HIDDEN))


# ----------------------------- pure-JAX reference -----------------------------------
def _reference_forward(params, input_ids, hidden):
    h0, c0 = hidden
    x = params["embedding"][input_ids].reshape(1, INPUT_DIM)
    h = h0.reshape(1, HIDDEN)
    c = c0.reshape(1, HIDDEN)
    gates = (x @ params["w_ih"].T + h @ params["w_hh"].T
             + params["b_ih"] + params["b_hh"])
    i_g = jax.nn.sigmoid(gates[:, 0 * HIDDEN:1 * HIDDEN])
    f_g = jax.nn.sigmoid(gates[:, 1 * HIDDEN:2 * HIDDEN])
    g_g = jnp.tanh(gates[:, 2 * HIDDEN:3 * HIDDEN])
    o_g = jax.nn.sigmoid(gates[:, 3 * HIDDEN:4 * HIDDEN])
    c_new = f_g * c + i_g * g_g
    h_new = o_g * jnp.tanh(c_new)
    out = h_new @ params["w_out"].T + params["b_out"]
    return out, (h_new.reshape(1, 1, HIDDEN), c_new.reshape(1, 1, HIDDEN))


def _reference_decode(params, step_ids, hidden):
    outs = []
    for t in range(step_ids.shape[0]):
        out, hidden = _reference_forward(params, step_ids[t], hidden)
        outs.append(out)
    return jnp.concatenate(outs, axis=0), hidden


if __name__ == "__main__":
    key = jax.random.PRNGKey(0)
    kp, ki, kh, kc = jax.random.split(key, 4)
    raw = init_params(kp)
    packed = pack_params(raw)          # one-time weight prep (not in the hot path)

    T = 6                              # decode steps amortized inside one kernel launch
    step_ids = jax.random.randint(ki, (T, OUTPUT), 0, VOCAB, dtype=jnp.int32)
    h0 = 0.1 * jax.random.normal(kh, (1, 1, HIDDEN), jnp.float32)
    c0 = 0.1 * jax.random.normal(kc, (1, 1, HIDDEN), jnp.float32)

    # --- module-equivalent single step (forward semantics) ---
    out1, (h1, c1) = decoder_forward(packed, step_ids[0], (h0, c0), hidden_list=None)
    jax.block_until_ready((out1, h1, c1))
    ref_out1, (ref_h1, ref_c1) = _reference_forward(raw, step_ids[0], (h0, c0))
    assert jnp.allclose(out1, ref_out1, atol=1e-2), "single-step output mismatch"
    assert jnp.allclose(h1, ref_h1, atol=1e-2), "single-step h mismatch"
    assert jnp.allclose(c1, ref_c1, atol=1e-2), "single-step c mismatch"

    # --- amortized multi-step decode (one pallas_call, weights VMEM-resident) ---
    outs, (hT, cT) = decoder_decode(packed, step_ids, (h0, c0))
    jax.block_until_ready((outs, hT, cT))
    ref_outs, (ref_hT, ref_cT) = _reference_decode(raw, step_ids, (h0, c0))
    assert jnp.allclose(outs, ref_outs, atol=1e-2), "multi-step outputs mismatch"
    assert jnp.allclose(hT, ref_hT, atol=1e-2), "final h mismatch"
    assert jnp.allclose(cT, ref_cT, atol=1e-2), "final c mismatch"

    print("KERNEL_OK")
</pallas_src>

<mosaic_0001>
module attributes {stable_mosaic.version = 11 : i64} {
  func.func @decode_steps_kernel(%arg0: i32, %arg1: memref<1x8xi32, #tpu.memory_space<smem>>, %arg2: memref<50x8x128xf32, #tpu.memory_space<vmem>>, %arg3: memref<2x32xf32, #tpu.memory_space<vmem>>, %arg4: memref<32x128xbf16, #tpu.memory_space<vmem>>, %arg5: memref<1x128xf32, #tpu.memory_space<vmem>>, %arg6: memref<32x128xbf16, #tpu.memory_space<vmem>>, %arg7: memref<1x128xf32, #tpu.memory_space<vmem>>, %arg8: memref<1x1x128xf32, #tpu.memory_space<vmem>>, %arg9: memref<2x32xf32, #tpu.memory_space<vmem>>, %arg10: memref<2x32xf32, #tpu.memory_space<vmem>>) attributes {dimension_semantics = [#tpu.dimension_semantics<arbitrary>], iteration_bounds = array<i64: 1>, scalar_prefetch = 1 : i64, scratch_operands = 1 : i64, tpu.core_type = #tpu.core_type<tc>, window_params = [{pipeline_mode = #tpu.pipeline_mode<synchronous>, transform_indices = @transform_0, window_bounds = array<i64: 50, 8, 128>}, {pipeline_mode = #tpu.pipeline_mode<synchronous>, transform_indices = @transform_1, window_bounds = array<i64: 2, 32>}, {pipeline_mode = #tpu.pipeline_mode<synchronous>, transform_indices = @transform_2, window_bounds = array<i64: 32, 128>}, {pipeline_mode = #tpu.pipeline_mode<synchronous>, transform_indices = @transform_3, window_bounds = array<i64: 1, 128>}, {pipeline_mode = #tpu.pipeline_mode<synchronous>, transform_indices = @transform_4, window_bounds = array<i64: 32, 128>}, {pipeline_mode = #tpu.pipeline_mode<synchronous>, transform_indices = @transform_5, window_bounds = array<i64: 1, 128>}, {transform_indices = @transform_6, window_bounds = array<i64: 1, 1, 128>}, {pipeline_mode = #tpu.pipeline_mode<synchronous>, transform_indices = @transform_7, window_bounds = array<i64: 2, 32>}]} {
    %c0_i32 = arith.constant 0 : i32
    %0 = arith.cmpi eq, %arg0, %c0_i32 : i32
    %1 = arith.extui %0 : i1 to i32
    %c0_i32_0 = arith.constant 0 : i32
    %2 = arith.cmpi ne, %1, %c0_i32_0 : i32
    scf.if %2 {
      %c0_40 = arith.constant 0 : index
      %c0_41 = arith.constant 0 : index
      %86 = vector.load %arg3[%c0_40, %c0_41] : memref<2x32xf32, #tpu.memory_space<vmem>>, vector<2x32xf32>
      %c0_42 = arith.constant 0 : index
      %c0_43 = arith.constant 0 : index
      %87 = vector.load %arg10[%c0_42, %c0_43] : memref<2x32xf32, #tpu.memory_space<vmem>>, vector<2x32xf32>
      tpu.vector_store %arg10[%c0_42, %c0_43], %86 {strides = array<i32>} : memref<2x32xf32, #tpu.memory_space<vmem>>, vector<2x32xf32>,
    } else {
    }
    %c0 = arith.constant 0 : index
    %c0_1 = arith.constant 0 : index
    %3 = vector.load %arg10[%c0, %c0_1] : memref<2x32xf32, #tpu.memory_space<vmem>>, vector<1x32xf32>
    %c1 = arith.constant 1 : index
    %c0_2 = arith.constant 0 : index
    %4 = vector.load %arg10[%c1, %c0_2] : memref<2x32xf32, #tpu.memory_space<vmem>>, vector<1x32xf32>
    %c0_3 = arith.constant 0 : index
    %c0_4 = arith.constant 0 : index
    %5 = vector.load %arg5[%c0_3, %c0_4] : memref<1x128xf32, #tpu.memory_space<vmem>>, vector<1x128xf32>
    %6 = arith.index_cast %arg0 : i32 to index
    %c0_5 = arith.constant 0 : index
    %7 = memref.load %arg1[%6, %c0_5] : memref<1x8xi32, #tpu.memory_space<smem>>
    %8 = arith.index_cast %7 : i32 to index
    %c0_6 = arith.constant 0 : index
    %c0_7 = arith.constant 0 : index
    %9 = vector.load %arg2[%8, %c0_6, %c0_7] : memref<50x8x128xf32, #tpu.memory_space<vmem>>, vector<1x1x128xf32>
    %10 = vector.shape_cast %9 : vector<1x1x128xf32> to vector<1x128xf32>
    %11 = arith.addf %5, %10 : vector<1x128xf32>
    %12 = arith.index_cast %arg0 : i32 to index
    %c1_8 = arith.constant 1 : index
    %13 = memref.load %arg1[%12, %c1_8] : memref<1x8xi32, #tpu.memory_space<smem>>
    %14 = arith.index_cast %13 : i32 to index
    %c1_9 = arith.constant 1 : index
    %c0_10 = arith.constant 0 : index
    %15 = vector.load %arg2[%14, %c1_9, %c0_10] : memref<50x8x128xf32, #tpu.memory_space<vmem>>, vector<1x1x128xf32>
    %16 = vector.shape_cast %15 : vector<1x1x128xf32> to vector<1x128xf32>
    %17 = arith.addf %11, %16 : vector<1x128xf32>
    %18 = arith.index_cast %arg0 : i32 to index
    %c2 = arith.constant 2 : index
    %19 = memref.load %arg1[%18, %c2] : memref<1x8xi32, #tpu.memory_space<smem>>
    %20 = arith.index_cast %19 : i32 to index
    %c2_11 = arith.constant 2 : index
    %c0_12 = arith.constant 0 : index
    %21 = vector.load %arg2[%20, %c2_11, %c0_12] : memref<50x8x128xf32, #tpu.memory_space<vmem>>, vector<1x1x128xf32>
    %22 = vector.shape_cast %21 : vector<1x1x128xf32> to vector<1x128xf32>
    %23 = arith.addf %17, %22 : vector<1x128xf32>
    %24 = arith.index_cast %arg0 : i32 to index
    %c3 = arith.constant 3 : index
    %25 = memref.load %arg1[%24, %c3] : memref<1x8xi32, #tpu.memory_space<smem>>
    %26 = arith.index_cast %25 : i32 to index
    %c3_13 = arith.constant 3 : index
    %c0_14 = arith.constant 0 : index
    %27 = vector.load %arg2[%26, %c3_13, %c0_14] : memref<50x8x128xf32, #tpu.memory_space<vmem>>, vector<1x1x128xf32>
    %28 = vector.shape_cast %27 : vector<1x1x128xf32> to vector<1x128xf32>
    %29 = arith.addf %23, %28 : vector<1x128xf32>
    %30 = arith.index_cast %arg0 : i32 to index
    %c4 = arith.constant 4 : index
    %31 = memref.load %arg1[%30, %c4] : memref<1x8xi32, #tpu.memory_space<smem>>
    %32 = arith.index_cast %31 : i32 to index
    %c4_15 = arith.constant 4 : index
    %c0_16 = arith.constant 0 : index
    %33 = vector.load %arg2[%32, %c4_15, %c0_16] : memref<50x8x128xf32, #tpu.memory_space<vmem>>, vector<1x1x128xf32>
    %34 = vector.shape_cast %33 : vector<1x1x128xf32> to vector<1x128xf32>
    %35 = arith.addf %29, %34 : vector<1x128xf32>
    %36 = arith.index_cast %arg0 : i32 to index
    %c5 = arith.constant 5 : index
    %37 = memref.load %arg1[%36, %c5] : memref<1x8xi32, #tpu.memory_space<smem>>
    %38 = arith.index_cast %37 : i32 to index
    %c5_17 = arith.constant 5 : index
    %c0_18 = arith.constant 0 : index
    %39 = vector.load %arg2[%38, %c5_17, %c0_18] : memref<50x8x128xf32, #tpu.memory_space<vmem>>, vector<1x1x128xf32>
    %40 = vector.shape_cast %39 : vector<1x1x128xf32> to vector<1x128xf32>
    %41 = arith.addf %35, %40 : vector<1x128xf32>
    %42 = arith.index_cast %arg0 : i32 to index
    %c6 = arith.constant 6 : index
    %43 = memref.load %arg1[%42, %c6] : memref<1x8xi32, #tpu.memory_space<smem>>
    %44 = arith.index_cast %43 : i32 to index
    %c6_19 = arith.constant 6 : index
    %c0_20 = arith.constant 0 : index
    %45 = vector.load %arg2[%44, %c6_19, %c0_20] : memref<50x8x128xf32, #tpu.memory_space<vmem>>, vector<1x1x128xf32>
    %46 = vector.shape_cast %45 : vector<1x1x128xf32> to vector<1x128xf32>
    %47 = arith.addf %41, %46 : vector<1x128xf32>
    %48 = arith.index_cast %arg0 : i32 to index
    %c7 = arith.constant 7 : index
    %49 = memref.load %arg1[%48, %c7] : memref<1x8xi32, #tpu.memory_space<smem>>
    %50 = arith.index_cast %49 : i32 to index
    %c7_21 = arith.constant 7 : index
    %c0_22 = arith.constant 0 : index
    %51 = vector.load %arg2[%50, %c7_21, %c0_22] : memref<50x8x128xf32, #tpu.memory_space<vmem>>, vector<1x1x128xf32>
    %52 = vector.shape_cast %51 : vector<1x1x128xf32> to vector<1x128xf32>
    %53 = arith.addf %47, %52 : vector<1x128xf32>
    %54 = arith.truncf %3 : vector<1x32xf32> to vector<1x32xbf16>
    %c0_23 = arith.constant 0 : index
    %c0_24 = arith.constant 0 : index
    %55 = vector.load %arg4[%c0_23, %c0_24] : memref<32x128xbf16, #tpu.memory_space<vmem>>, vector<32x128xbf16>
    %cst = arith.constant dense<0.000000e+00> : vector<1x128xf32>
    %56 = tpu.matmul %54, %55, %cst {dimension_numbers = #tpu.dot_dimension_numbers<[1], [0], [0], [1], [0, 0, 1, 1], [], []>} : vector<1x32xbf16>, vector<32x128xbf16>, vector<1x128xf32> -> vector<1x128xf32>
    %57 = arith.addf %53, %56 : vector<1x128xf32>
    %58 = arith.negf %57 : vector<1x128xf32>
    %59 = math.exp %58 : vector<1x128xf32>
    %cst_25 = arith.constant 1.000000e+00 : f32
    %60 = vector.broadcast %cst_25 : f32 to vector<1x128xf32>
    %61 = arith.addf %60, %59 : vector<1x128xf32>
    %62 = arith.divf %60, %61 : vector<1x128xf32>
    %63 = vector.extract_strided_slice %62 {offsets = [0, 0], sizes = [1, 32], strides = [1, 1]} : vector<1x128xf32> to vector<1x32xf32>
    %64 = vector.extract_strided_slice %62 {offsets = [0, 32], sizes = [1, 32], strides = [1, 1]} : vector<1x128xf32> to vector<1x32xf32>
    %65 = vector.extract_strided_slice %62 {offsets = [0, 96], sizes = [1, 32], strides = [1, 1]} : vector<1x128xf32> to vector<1x32xf32>
    %66 = vector.extract_strided_slice %57 {offsets = [0, 64], sizes = [1, 32], strides = [1, 1]} : vector<1x128xf32> to vector<1x32xf32>
    %67 = math.tanh %66 : vector<1x32xf32>
    %68 = arith.mulf %64, %4 : vector<1x32xf32>
    %69 = arith.mulf %63, %67 : vector<1x32xf32>
    %70 = arith.addf %68, %69 : vector<1x32xf32>
    %71 = math.tanh %70 : vector<1x32xf32>
    %72 = arith.mulf %65, %71 : vector<1x32xf32>
    %73 = arith.truncf %72 : vector<1x32xf32> to vector<1x32xbf16>
    %c0_26 = arith.constant 0 : index
    %c0_27 = arith.constant 0 : index
    %74 = vector.load %arg6[%c0_26, %c0_27] : memref<32x128xbf16, #tpu.memory_space<vmem>>, vector<32x128xbf16>
    %cst_28 = arith.constant dense<0.000000e+00> : vector<1x128xf32>
    %75 = tpu.matmul %73, %74, %cst_28 {dimension_numbers = #tpu.dot_dimension_numbers<[1], [0], [0], [1], [0, 0, 1, 1], [], []>} : vector<1x32xbf16>, vector<32x128xbf16>, vector<1x128xf32> -> vector<1x128xf32>
    %c0_29 = arith.constant 0 : index
    %c0_30 = arith.constant 0 : index
    %76 = vector.load %arg7[%c0_29, %c0_30] : memref<1x128xf32, #tpu.memory_space<vmem>>, vector<1x128xf32>
    %77 = arith.addf %75, %76 : vector<1x128xf32>
    %c0_31 = arith.constant 0 : index
    %c0_32 = arith.constant 0 : index
    %c0_33 = arith.constant 0 : index
    %78 = vector.load %arg8[%c0_31, %c0_32, %c0_33] : memref<1x1x128xf32, #tpu.memory_space<vmem>>, vector<1x1x128xf32>
    %79 = vector.shape_cast %78 : vector<1x1x128xf32> to vector<1x128xf32>
    %80 = vector.shape_cast %77 : vector<1x128xf32> to vector<1x1x128xf32>
    tpu.vector_store %arg8[%c0_31, %c0_32, %c0_33], %80 {strides = array<i32>} : memref<1x1x128xf32, #tpu.memory_space<vmem>>, vector<1x1x128xf32>,
    %c0_34 = arith.constant 0 : index
    %c0_35 = arith.constant 0 : index
    %81 = vector.load %arg10[%c0_34, %c0_35] : memref<2x32xf32, #tpu.memory_space<vmem>>, vector<1x32xf32>
    tpu.vector_store %arg10[%c0_34, %c0_35], %72 {strides = array<i32>} : memref<2x32xf32, #tpu.memory_space<vmem>>, vector<1x32xf32>,
    %c1_36 = arith.constant 1 : index
    %c0_37 = arith.constant 0 : index
    %82 = vector.load %arg10[%c1_36, %c0_37] : memref<2x32xf32, #tpu.memory_space<vmem>>, vector<1x32xf32>
    tpu.vector_store %arg10[%c1_36, %c0_37], %70 {strides = array<i32>} : memref<2x32xf32, #tpu.memory_space<vmem>>, vector<1x32xf32>,
    %c0_i32_38 = arith.constant 0 : i32
    %83 = arith.cmpi eq, %arg0, %c0_i32_38 : i32
    %84 = arith.extui %83 : i1 to i32
    %c0_i32_39 = arith.constant 0 : i32
    %85 = arith.cmpi ne, %84, %c0_i32_39 : i32
    scf.if %85 {
      %c0_40 = arith.constant 0 : index
      %c0_41 = arith.constant 0 : index
      %86 = vector.load %arg10[%c0_40, %c0_41] : memref<2x32xf32, #tpu.memory_space<vmem>>, vector<2x32xf32>
      %c0_42 = arith.constant 0 : index
      %c0_43 = arith.constant 0 : index
      %87 = vector.load %arg9[%c0_42, %c0_43] : memref<2x32xf32, #tpu.memory_space<vmem>>, vector<2x32xf32>
      tpu.vector_store %arg9[%c0_42, %c0_43], %86 {strides = array<i32>} : memref<2x32xf32, #tpu.memory_space<vmem>>, vector<2x32xf32>,
    } else {
    }
    return
  }
  func.func @transform_0(%arg0: i32, %arg1: memref<1x8xi32, #tpu.memory_space<smem>>) -> (i32, i32, i32) {
    %c0_i32 = arith.constant 0 : i32
    %c0_i32_0 = arith.constant 0 : i32
    %c0_i32_1 = arith.constant 0 : i32
    %c0_i32_2 = arith.constant 0 : i32
    return %c0_i32, %c0_i32_0, %c0_i32_1 : i32, i32, i32
  }
  func.func @transform_1(%arg0: i32, %arg1: memref<1x8xi32, #tpu.memory_space<smem>>) -> (i32, i32) {
    %c0_i32 = arith.constant 0 : i32
    %c0_i32_0 = arith.constant 0 : i32
    %c0_i32_1 = arith.constant 0 : i32
    return %c0_i32, %c0_i32_0 : i32, i32
  }
  func.func @transform_2(%arg0: i32, %arg1: memref<1x8xi32, #tpu.memory_space<smem>>) -> (i32, i32) {
    %c0_i32 = arith.constant 0 : i32
    %c0_i32_0 = arith.constant 0 : i32
    %c0_i32_1 = arith.constant 0 : i32
    return %c0_i32, %c0_i32_0 : i32, i32
  }
  func.func @transform_3(%arg0: i32, %arg1: memref<1x8xi32, #tpu.memory_space<smem>>) -> (i32, i32) {
    %c0_i32 = arith.constant 0 : i32
    %c0_i32_0 = arith.constant 0 : i32
    %c0_i32_1 = arith.constant 0 : i32
    return %c0_i32, %c0_i32_0 : i32, i32
  }
  func.func @transform_4(%arg0: i32, %arg1: memref<1x8xi32, #tpu.memory_space<smem>>) -> (i32, i32) {
    %c0_i32 = arith.constant 0 : i32
    %c0_i32_0 = arith.constant 0 : i32
    %c0_i32_1 = arith.constant 0 : i32
    return %c0_i32, %c0_i32_0 : i32, i32
  }
  func.func @transform_5(%arg0: i32, %arg1: memref<1x8xi32, #tpu.memory_space<smem>>) -> (i32, i32) {
    %c0_i32 = arith.constant 0 : i32
    %c0_i32_0 = arith.constant 0 : i32
    %c0_i32_1 = arith.constant 0 : i32
    return %c0_i32, %c0_i32_0 : i32, i32
  }
  func.func @transform_6(%arg0: i32, %arg1: memref<1x8xi32, #tpu.memory_space<smem>>) -> (i32, i32, i32) {
    %c0_i32 = arith.constant 0 : i32
    %c0_i32_0 = arith.constant 0 : i32
    %c0_i32_1 = arith.constant 0 : i32
    return %arg0, %c0_i32, %c0_i32_0 : i32, i32, i32
  }
  func.func @transform_7(%arg0: i32, %arg1: memref<1x8xi32, #tpu.memory_space<smem>>) -> (i32, i32) {
    %c0_i32 = arith.constant 0 : i32
    %c0_i32_0 = arith.constant 0 : i32
    %c0_i32_1 = arith.constant 0 : i32
    return %c0_i32, %c0_i32_0 : i32, i32
  }
}

</mosaic_0001>

<bundles_post_ra>
// kernel: _decode_steps_impl.1
= control target key start
LH: loop header
LB: loop body
LE: loop exit
PB: predicated region body
PF: predicated region fallthrough
CT: control target
= control target key end

     0   :  { %s635_s0 = inlined_call_operand.vmem [shape: s32[1,8], index: 0, kind: input, shape index: {}]   ;;  %s636_s1 = inlined_call_operand.hbm [shape: f32[50,8,128], index: 1, kind: input, shape index: {}]   ;;  %s637_s2 = inlined_call_operand.vmem [shape: f32[2,32], index: 2, kind: input, shape index: {}]   ;;  %s638_s3 = inlined_call_operand.vmem [shape: bf16[32,128], index: 3, kind: input, shape index: {}]   ;;  %s639_s4 = inlined_call_operand.vmem [shape: f32[1,128], index: 4, kind: input, shape index: {}]   ;;  %s640_s5 = inlined_call_operand.hbm [shape: bf16[32,128], index: 5, kind: input, shape index: {}]   ;;  %s641_s6 = inlined_call_operand.vmem [shape: f32[1,128], index: 6, kind: input, shape index: {}]   ;;  %s642_s7 = inlined_call_operand.vmem [shape: f32[1,1,128], index: 7, kind: output, shape index: {0}]   ;;  %s643_s8 = inlined_call_operand.hbm [shape: f32[2,32], index: 8, kind: output, shape index: {1}]  }
   0x1   :  { %s14_s29 = sshll.u32 %s635_s0, 4  ;;  %s15_s29 = int_to_ptr.vmem [resolvable:$true] %s14_s29 }
   0x2   :  { %s420_s30 = scalar_lea.vmem %s15_s29, 16  ;;  %p425_p1 = scmp.lt.s32.totalorder %s15_s29, %s15_s29 }
   0x3   :  { %p421_p0 = scmp.ne.s32.totalorder %s15_s29, %s420_s30  ;;  %p426_p2 = scmp.lt.s32.totalorder %s420_s30, %s420_s30 }
   0x5   :  { %p427_p3 = por %p426_p2, %p425_p1 }
   0x7   :  { %p428_p4 = pnand %p427_p3, %p421_p0 }
   0x9   :  { %431 = shalt.err (!%p428_p4)  }
   0xa   :  { %s506_s9 = smov [#allocation4]  }
   0xb   :  { %17 = dma.vmem_to_smem %s15_s29, 16, %s506_s9, [#allocation3] }
   0xc   :  { %498 = dma.done.wait [#allocation3], 16 }
   0xd   :  { %499 = vsyncadd [#allocation3], 4294967280 }
   0xe   :  { %19 = sfence }
   0xf   :  { %20 = vsyncpa [#allocation6], 0 }
  0x10   :  { %21 = vsyncpa [#allocation9], 0 }
  0x11   :  { %22 = vsyncpa [#allocation7], 0  ;;  %s507_s10 = smov [#allocation5]   ;;  %s432_s13 = scalar_lea.hbm %s636_s1, 6400 }
  0x12   :  { %s28_s11 = sshll.u32 %s507_s10, 4  ;;  %p433_p5 = scmp.ne.s32.totalorder %s636_s1, %s432_s13  ;;  %s29_s11 = int_to_ptr.vmem [resolvable:$true] %s28_s11 }
  0x13   :  { %p436_p6 = scmp.lt.u32.totalorder %s432_s13, %s636_s1 }
  0x15   :  { %p438_p7 = pnand %p436_p6, %p433_p5 }
  0x17   :  { %441 = shalt.err (!%p438_p7)
}
  0x18   :  { %s442_s18 = scalar_lea.vmem %s29_s11, 6400  ;;  %p447_p9 = scmp.lt.s32.totalorder %s29_s11, %s29_s11 }
  0x19   :  { %p443_p8 = scmp.ne.s32.totalorder %s29_s11, %s442_s18  ;;  %p448_p10 = scmp.lt.s32.totalorder %s442_s18, %s442_s18 }
  0x1b   :  { %p449_p11 = por %p448_p10, %p447_p9 }
  0x1d   :  { %p450_p12 = pnand %p449_p11, %p443_p8 }
  0x1f   :  { %453 = shalt.err (!%p450_p12)
}
  0x20   :  { %s508_s19 = smov 128   ;;  %s509_s20 = smov 8  }
  0x21   :  { %34 = dma.hbm_to_vmem [thread:$0]  %s636_s1, 6400, %s29_s11, [#allocation6], %s508_s19, %s508_s19, %s509_s20  }
  0x22   :  { %s510_s23 = smov [#allocation8]   ;;  %s454_s27 = scalar_lea.hbm %s640_s5, 256 }
  0x23   :  { %s46_s24 = sshll.u32 %s510_s23, 4  ;;  %p455_p13 = scmp.ne.s32.totalorder %s640_s5, %s454_s27  ;;  %s47_s24 = int_to_ptr.vmem [resolvable:$true] %s46_s24 }
  0x24   :  { %p458_p0 = scmp.lt.u32.totalorder %s454_s27, %s640_s5 }
  0x26   :  { %p460_p1 = pnand %p458_p0, %p455_p13 }
  0x28   :  { %463 = shalt.err (!%p460_p1)
}
  0x29   :  { %s464_s10 = scalar_lea.vmem %s47_s24, 256  ;;  %p469_p3 = scmp.lt.s32.totalorder %s47_s24, %s47_s24 }
  0x2a   :  { %p465_p2 = scmp.ne.s32.totalorder %s47_s24, %s464_s10  ;;  %p470_p4 = scmp.lt.s32.totalorder %s464_s10, %s464_s10 }
  0x2c   :  { %p471_p5 = por %p470_p4, %p469_p3 }
  0x2e   :  { %p472_p6 = pnand %p471_p5, %p465_p2 }
  0x30   :  { %475 = shalt.err (!%p472_p6)
}
  0x31   :  { %s511_s1 = smov 64   ;;  %s512_s11 = smov 4  }
  0x32   :  { %52 = dma.hbm_to_vmem [thread:$0]  %s640_s5, 256, %s47_s24, [#allocation9], %s511_s1, %s511_s1, %s512_s11  }
  0x33   :  { %500 = dma.done.wait [#allocation6], 6400  }
  0x34   :  { %501 = vsyncadd [#allocation6], 4294960896 }
  0x35   :  { %502 = dma.done.wait [#allocation9], 256  }
  0x36   :  { %503 = vsyncadd [#allocation9], 4294967040  ;;  %v513_v0 = vmov 0.0   ;;  %vm514_vm0 = vmmov 0   ;;  %v408_v1 = vld [vmem:[%s638_s3] sm:$0xff]   ;;  %vm67_vm1 = vcmask 254976   ;;  %v200_v29 = vlaneseq }
  0x37   :  { %379 = vmatprep.subr.bf16.mxu0 %v513_v0  ;;  %383 = vmatprep.mubr.msk.bf16.mxu0 %vm514_vm0, %v513_v0  ;;  %v409_v2 = vld [vmem:[%s638_s3 + $0x8] sm:$0xff]   ;;  %v66_v3 = vld [vmem:[%s637_s2] sm:$0x3]  ;;  %vm137_vm2 = vcmask 261120   ;;  %s73_s18 = sld [smem:[#allocation4]]  ;;  %s351_s19 = sld [smem:[#allocation4 + $0x1]] }
  0x38   :  { %387 = vmatprep.subr.bf16.mxu1 %v513_v0  ;;  %391 = vmatprep.mubr.msk.bf16.mxu1 %vm514_vm0, %v513_v0  ;;  %68 = vst.msk [vmem:[#allocation2] sm:$0x3] %vm67_vm1, %v66_v3  ;;  %s353_s21 = sld [smem:[#allocation4 + $0x2]]  ;;  %s355_s3 = sld [smem:[#allocation4 + $0x3]]  ;;  %v71_v6 = vld [vmem:[%s639_s4] sm:$0x1] }
  0x39   :  { %380 = vmatpush3.bf16.msra.mxu0 %v408_v1  ;;  %s357_s26 = sld [smem:[#allocation4 + $0x4]]  ;;  %s359_s29 = sld [smem:[#allocation4 + $0x5]]  ;;  %v515_v27 = vmov 1966171168   ;;  %v201_v32 = vshrl.u32 %v200_v29, 7  ;;  %v410_v47 = vld [vmem:[#allocation8] sm:$0xff]  }
  0x3a   :  { %381 = vmatprep.subr.bf16.mxu0 %v513_v0  ;;  %s361_s10 = sld [smem:[#allocation4 + $0x6]]  ;;  %s363_s12 = sld [smem:[#allocation4 + $0x7]]  ;;  %v198_v28 = vunpack.c.l.s4 %v515_v27  ;;  %388 = vmatpush3.bf16.msra.mxu1 %v410_v47  ;;  %v411_v48 = vld [vmem:[#allocation8 + $0x8] sm:$0xff]   ;;  %vm297_vm3 = vcmask 253952  }
  0x3b   :  { %s516_s17 = smov 32   ;;  %389 = vmatprep.subr.bf16.mxu1 %v513_v0  ;;  %v292_v51 = vsub.s32 0, %v201_v32 }
  0x3c   :  { %v199_v31 = vunpack.c.0.s8 %v198_v28 }
  0x3d   :  { %382 = vmatpush3.bf16.msra.mxu0 %v409_v2  ;;  %s350_s20 = sshll.u32 %s73_s18, 3  ;;  %s352_s22 = sshll.u32 %s351_s19, 3 }
  0x3e   :  { %s75_s2 = scalar_lea.vmem [#allocation5], %s350_s20  ;;  %s354_s25 = sshll.u32 %s353_s21, 3  ;;  %v202_v33 = vsub.s32 %v199_v31, %v201_v32  ;;  %390 = vmatpush3.bf16.msra.mxu1 %v411_v48 }
  0x3f   :  { %v69_v4 = vld [vmem:[#allocation2] sm:$0x1]  ;;  %s81_s27 = scalar_lea.vmem [#allocation5], %s352_s22  ;;  %s356_s28 = sshll.u32 %s355_s3, 3 }
  0x40   :  { %v120_v5 = vpack.c.bf16 %v69_v4, %v69_v4  ;;  %v76_v7 = vld [vmem:[%s75_s2] sm:$0x1]  ;;  %v82_v9 = vld [vmem:[%s81_s27 + $0x1] sm:$0x1]  ;;  %s87_s30 = scalar_lea.vmem [#allocation5], %s354_s25  ;;  %s358_s9 = sshll.u32 %s357_s26, 3 }
  0x41   :  { %v77_v8 = vadd.f32 %v76_v7, %v71_v6  ;;  %v88_v11 = vld [vmem:[%s87_s30 + $0x2] sm:$0x1]  ;;  %s93_s11 = scalar_lea.vmem [#allocation5], %s356_s28  ;;  %s360_s0 = sshll.u32 %s359_s29, 3 }
  0x42   :  { %384 = vmatmul.mubr.msk.bf16.vlgmr.msra.gmra.mrb[0].mxu0 %vm137_vm2, %v120_v5  ;;  %v94_v13 = vld [vmem:[%s93_s11 + $0x3] sm:$0x1]  ;;  %s99_s4 = scalar_lea.vmem [#allocation5], %s358_s9  ;;  %s362_s13 = sshll.u32 %s361_s10, 3 }
  0x43   :  { %v83_v10 = vadd.f32 %v82_v9, %v77_v8  ;;  %v100_v15 = vld [vmem:[%s99_s4 + $0x4] sm:$0x1]  ;;  %s105_s14 = scalar_lea.vmem [#allocation5], %s360_s0  ;;  %s364_s5 = sshll.u32 %s363_s12, 3 }
  0x44   :  { %v106_v17 = vld [vmem:[%s105_s14 + $0x5] sm:$0x1]  ;;  %s111_s15 = scalar_lea.vmem [#allocation5], %s362_s13  ;;  %s117_s16 = scalar_lea.vmem [#allocation5], %s364_s5 }
  0x45   :  { %v89_v12 = vadd.f32 %v88_v11, %v83_v10  ;;  %v112_v19 = vld [vmem:[%s111_s15 + $0x6] sm:$0x1]  ;;  %v118_v21 = vld [vmem:[%s117_s16 + $0x7] sm:$0x1]  ;;  %s517_s18 = smov 96  }
  0x46   :  { %v369_v34 = vld.sshfl [vmem:[#allocation2 + $0x1] sm:$0x1 pattern:$0x75316420] }
  0x47   :  { %v95_v14 = vadd.f32 %v94_v13, %v89_v12  ;;  %v203_v36 = vrot.slane %v369_v34, %v202_v33 }
  0x49   :  { %v101_v16 = vadd.f32 %v100_v15, %v95_v14 }
  0x4b   :  { %v107_v18 = vadd.f32 %v106_v17, %v101_v16 }
  0x4d   :  { %v113_v20 = vadd.f32 %v112_v19, %v107_v18 }
  0x4f   :  { %v119_v22 = vadd.f32 %v118_v21, %v113_v20 }
 0x115   :  { %v175_v23 = vpop.f32.mrb[0].mxu0 }
 0x116   :  { %v181_v24 = vadd.f32 %v175_v23, %v119_v22  ;;  %v385_v25 = vpop.f32.mrb[1].mxu0 }
 0x117   :  { %v178_v26 = vpop.f32.mrb[2].mxu0 }
 0x118   :  { %v386_v30 = vpop.f32.mrb[3].mxu0  ;;  %412 = vtanh.f32 %v181_v24  ;;  %v368_v37 = vmul.f32 -1.442695, %v181_v24 }
 0x11a   :  { %414 = vpow2.f32 %v368_v37 }
 0x122   :  { %v413_v35 = vpop.eup %412 }
 0x123   :  { %209 = vrot.lane.b32.xlu0 %v413_v35, %s511_s1 }
 0x124   :  { %v415_v38 = vpop.eup %414 }
 0x125   :  { %v185_v39 = vadd.f32 1.0, %v415_v38 }
 0x127   :  { %204 = vrot.lane.b32.xlu0 %v203_v36, %s516_s17  ;;  %416 = vrcp.f32 %v185_v39 }
 0x131   :  { %v417_v40 = vpop.eup %416 }
 0x195   :  { %v210_v41 = vpop.permute.xlu0 %209 }
 0x196   :  { %v212_v42 = vmul.f32 %v417_v40, %v210_v41 }
 0x198   :  { %214 = vrot.lane.b32.xlu1 %v212_v42, %s516_s17 }
 0x199   :  { %v205_v43 = vpop.permute.xlu0 %204 }
 0x19a   :  { %v207_v44 = vmul.f32 %v417_v40, %v205_v43 }
 0x20a   :  { %v215_v45 = vpop.permute.xlu1 %214 }
 0x20b   :  { %v217_v46 = vadd.f32 %v215_v45, %v207_v44 }
 0x20d   :  { %418 = vtanh.f32 %v217_v46  ;;  %v303_v55 = vrot.slane %v217_v46, %v292_v51 }
 0x217   :  { %v419_v49 = vpop.eup %418 }
 0x218   :  { %220 = vrot.lane.b32.xlu1 %v419_v49, %s511_s1  ;;  %s518_s1 = smov [#allocation10]  }
 0x219   :  { %s322_s19 = sshll.u32 %s518_s1, 4  ;;  %s323_s19 = int_to_ptr.vmem [resolvable:$true] %s322_s19 }
 0x21a   :  { %s476_s20 = scalar_lea.vmem %s323_s19, 32  ;;  %p481_p8 = scmp.lt.s32.totalorder %s323_s19, %s323_s19 }
 0x21b   :  { %p477_p7 = scmp.ne.s32.totalorder %s323_s19, %s476_s20  ;;  %p482_p9 = scmp.lt.s32.totalorder %s476_s20, %s476_s20 }
 0x21d   :  { %p483_p10 = por %p482_p9, %p481_p8 }
 0x21f   :  { %p484_p11 = pnand %p483_p10, %p477_p7 }
 0x28a   :  { %v221_v50 = vpop.permute.xlu1 %220 }
 0x28b   :  { %v223_v52 = vmul.f32 %v417_v40, %v221_v50 }
 0x28d   :  { %v224_v53 = vpack.c.bf16 %v223_v52, %v223_v52  ;;  %v293_v54 = vrot.slane %v223_v52, %v292_v51 }
 0x28f   :  { %294 = vrot.lane.b32.xlu1 %v293_v54, %s516_s17  ;;  %231 = vrot.lane.b32.xlu0 %v224_v53, %s516_s17 }
 0x293   :  { %304 = vrot.lane.b32.xlu0 %v303_v55, %s517_s18 }
 0x301   :  { %v295_v56 = vpop.permute.xlu1 %294  ;;  %v232_v57 = vpop.permute.xlu0 %231 }
 0x302   :  { %298 = vst.msk [vmem:[#allocation2] sm:$0x1] %vm297_vm3, %v295_v56  ;;  %392 = vmatmul.mubr.msk.bf16.vlgmr.msra.gmra.mrb[0].mxu1 %vm137_vm2, %v232_v57 }
 0x305   :  { %v305_v58 = vpop.permute.xlu0 %304 }
 0x306   :  { %307 = vst.msk [vmem:[#allocation2 + $0x1] sm:$0x1] %vm297_vm3, %v305_v58 }
 0x30d   :  { %v311_v59 = vld [vmem:[#allocation2] sm:$0x3] }
 0x30e   :  { %313 = vst.msk [vmem:[#allocation10] sm:$0x3] %vm67_vm1, %v311_v59 }
 0x30f   :  { %487 = shalt.err (!%p484_p11)
}
 0x310   :  { %s488_s3 = scalar_lea.hbm %s643_s8, 32 }
 0x311   :  { %p489_p12 = scmp.ne.s32.totalorder %s643_s8, %s488_s3  ;;  %p492_p13 = scmp.lt.u32.totalorder %s488_s3, %s643_s8 }
 0x313   :  { %p494_p0 = pnand %p492_p13, %p489_p12 }
 0x315   :  { %497 = shalt.err (!%p494_p0)
}
 0x316   :  { %325 = dma.vmem_to_hbm [thread:$0]  %s323_s19, 32, %s643_s8, [#allocation7]   ;;  %v229_v60 = vld [vmem:[%s641_s6] sm:$0x1] }
 0x3d5   :  { %v282_v61 = vpop.f32.mrb[0].mxu1 }
 0x3d6   :  { %v283_v62 = vadd.f32 %v282_v61, %v229_v60  ;;  %v393_v63 = vpop.f32.mrb[1].mxu1 }
 0x3d7   :  { %v285_v0 = vpop.f32.mrb[2].mxu1 }
 0x3d8   :  { %288 = vst [vmem:[%s642_s7] sm:$0x1] %v283_v62  ;;  %v394_v1 = vpop.f32.mrb[3].mxu1 }
 0x3d9   :  { %504 = dma.done.wait [#allocation7], 32  }
 0x3da   :  { %505 = vsyncadd [#allocation7], 4294967264 }
 0x3db   :  { %331 = vsyncpa [#allocation6], 1 }
 0x3dc   :  { %332 = vsyncpa [#allocation9], 1 }
 0x3dd   :  { %333 = vsyncpa [#allocation7], 1 }

</bundles_post_ra>
